<compile_context>
chip_gen: v7x
topology: tpu7x:2x2x1
jax: 0.10.0
libtpu: 0.0.40
codegen_flags: <defaults>
</compile_context>

<pallas_src>
import jax
import jax.numpy as jnp
from jax import lax
from jax.experimental import pallas as pl
from jax.experimental.pallas import tpu as pltpu


_VMEM = pl.BlockSpec(memory_space=pltpu.MemorySpace.VMEM)
_NEG_INF = -1e30


# ---------------------------------------------------------------------------
# Single-learner kernel (direct module semantics; no grid, one VMEM tile)
# ---------------------------------------------------------------------------
def base_learner_kernel(x_ref, w_ref, b_ref, o_ref):
    x = x_ref[...].astype(jnp.float32)            # (N, Z)
    w = w_ref[...].astype(jnp.float32)            # (way, Z)
    b = b_ref[...].astype(jnp.float32)            # (1, way)

    # x @ w.T without an explicit transpose: contract axis 1 of both operands.
    logits = lax.dot_general(
        x, w,
        dimension_numbers=(((1,), (1,)), ((), ())),
        preferred_element_type=jnp.float32,
    ) + b                                         # (N, way)

    # Numerically-stable softmax over the `way` axis (exact divide).
    m = jnp.max(logits, axis=-1, keepdims=True)
    e = jnp.exp(logits - m)
    denom = jnp.sum(e, axis=-1, keepdims=True)
    o_ref[...] = (e / denom).astype(o_ref.dtype)


def base_learner_forward(input_x, fc2_w, fc2_b):
    """softmax(linear(input_x, fc2_w, fc2_b), dim=1) for a single learner."""
    N, _ = input_x.shape
    way = fc2_w.shape[0]
    b2d = fc2_b.reshape(1, way)                   # 2-D for clean VMEM layout

    return pl.pallas_call(
        base_learner_kernel,
        out_shape=jax.ShapeDtypeStruct((N, way), input_x.dtype),
        # No grid: avoids the degenerate 1-step pipeline prologue/epilogue and
        # the per-operand double-buffer allocation.
        in_specs=[_VMEM, _VMEM, _VMEM],
        out_specs=_VMEM,
    )(input_x, fc2_w, b2d)


# ---------------------------------------------------------------------------
# Fused kernel: T independent BaseLearner instances in ONE grid-less call.
#
#   x_ref  : (T*N, Z)        all task inputs stacked along rows
#   w_ref  : (Z, Wp)         per-task fc2_w.T concatenated along columns,
#                            zero-padded to Wp = round_up(T*way, 128)
#   mb_ref : (T*N, Wp)       additive mask-with-bias: fc2_b[t, w] at the
#                            (row in task t, column in task t) positions,
#                            -1e30 everywhere else (cross-task + lane padding)
#   o_ref  : (T*N, Wp)       lane-dense softmax output; diagonal blocks are
#                            the per-task results, masked columns are 0.
# ---------------------------------------------------------------------------
def base_learner_fused_kernel(x_ref, w_ref, mb_ref, o_ref):
    x = x_ref[...].astype(jnp.float32)            # (T*N, Z)
    w = w_ref[...].astype(jnp.float32)            # (Z, Wp)

    # One MXU-friendly matmul feeds every task's logits at once.
    logits = jnp.dot(x, w, preferred_element_type=jnp.float32)
    logits = logits + mb_ref[...].astype(jnp.float32)   # bias + off-task mask

    # Masked, numerically-stable softmax: exp(-1e30 - m) underflows to exactly
    # 0, so each row's denominator only sums its own task's `way` columns.
    m = jnp.max(logits, axis=-1, keepdims=True)
    e = jnp.exp(logits - m)
    denom = jnp.sum(e, axis=-1, keepdims=True)
    o_ref[...] = (e / denom).astype(o_ref.dtype)


def base_learner_forward_fused(input_x, fc2_w, fc2_b):
    """Fused forward for T learners.

    input_x : [T, N, Z]   fc2_w : [T, way, Z]   fc2_b : [T, way]
    returns : [T, N, way]
    """
    T, N, Z = input_x.shape
    way = fc2_w.shape[1]
    W = T * way
    Wp = ((W + 127) // 128) * 128                 # lane-dense padded width

    # --- wrapper-side (XLA) packing: tiny, constant-shaped plumbing ----------
    x_all = input_x.reshape(T * N, Z)

    # W_cat[z, t*way + w] = fc2_w[t, w, z]  (i.e. per-task transposed weights
    # concatenated along columns), zero-padded to Wp columns.
    w_cat = jnp.transpose(fc2_w, (2, 0, 1)).reshape(Z, W)
    w_cat = jnp.pad(w_cat, ((0, 0), (0, Wp - W)))

    # Additive mask with the bias folded in.
    row_task = jnp.repeat(jnp.arange(T, dtype=jnp.int32), N)          # (T*N,)
    col_task = jnp.arange(Wp, dtype=jnp.int32) // way                 # (Wp,)
    valid = row_task[:, None] == col_task[None, :]                    # (T*N, Wp)
    bias_full = jnp.pad(fc2_b.reshape(W), (0, Wp - W)).astype(jnp.float32)
    mask_bias = jnp.where(valid, bias_full[None, :],
                          jnp.float32(_NEG_INF))                      # (T*N, Wp)

    out_full = pl.pallas_call(
        base_learner_fused_kernel,
        out_shape=jax.ShapeDtypeStruct((T * N, Wp), input_x.dtype),
        # No grid: the whole fused problem is a single VMEM-resident block, so
        # there is no per-step pipeline overhead and stores are lane-dense.
        in_specs=[_VMEM, _VMEM, _VMEM],
        out_specs=_VMEM,
    )(x_all, w_cat, mask_bias)

    # Extract the per-task diagonal blocks: out[t, n, w] = full[t*N+n, t*way+w].
    o4 = out_full[:, :W].reshape(T, N, T, way)
    idx = jnp.arange(T)
    return o4[idx, :, idx, :]                     # (T, N, way)


if __name__ == "__main__":
    # Small shapes consistent with the module: config['way']=5, z_dim=32, N=8.
    way, z_dim, N = 5, 32, 8
    T = 16                                        # fused learner instances

    key = jax.random.PRNGKey(0)
    kx, kw, kbx, kbw = jax.random.split(key, 4)

    # Deterministic param init mirroring __init__:
    #   fc2_w: kaiming_normal_ (fan_in mode, gain=sqrt(2)) -> std = sqrt(2/z_dim)
    #   fc2_b: zeros
    fc2_w = jax.random.normal(kw, (way, z_dim), dtype=jnp.float32) * jnp.sqrt(
        2.0 / z_dim
    )
    fc2_b = jnp.zeros((way,), dtype=jnp.float32)
    input_x = jax.random.normal(kx, (N, z_dim), dtype=jnp.float32)

    # ---- single-learner path (module semantics) ------------------------------
    out = base_learner_forward(input_x, fc2_w, fc2_b)
    out = jax.block_until_ready(out)

    ref = jax.nn.softmax(input_x @ fc2_w.T + fc2_b, axis=1)
    assert out.shape == (N, way)
    assert jnp.allclose(out, ref, atol=1e-4, rtol=1e-4)
    assert jnp.allclose(jnp.sum(out, axis=1), 1.0, atol=1e-4)

    # ---- fused path (T learners, one grid-less kernel) ------------------------
    bx = jax.random.normal(kbx, (T, N, z_dim), dtype=jnp.float32)
    bw = jax.random.normal(kbw, (T, way, z_dim), dtype=jnp.float32) * jnp.sqrt(
        2.0 / z_dim
    )
    bb = jax.random.normal(key, (T, way), dtype=jnp.float32) * 0.1

    bout = base_learner_forward_fused(bx, bw, bb)
    bout = jax.block_until_ready(bout)

    bref = jax.vmap(
        lambda x, w, b: jax.nn.softmax(x @ w.T + b, axis=1)
    )(bx, bw, bb)
    assert bout.shape == (T, N, way)
    assert jnp.allclose(bout, bref, atol=1e-4, rtol=1e-4)
    assert jnp.allclose(jnp.sum(bout, axis=-1), 1.0, atol=1e-4)

    print("KERNEL_OK")
</pallas_src>

<mosaic_0001>
module attributes {stable_mosaic.version = 11 : i64} {
  func.func @base_learner_kernel(%arg0: memref<8x32xf32, #tpu.memory_space<vmem>>, %arg1: memref<5x32xf32, #tpu.memory_space<vmem>>, %arg2: memref<1x5xf32, #tpu.memory_space<vmem>>, %arg3: memref<8x5xf32, #tpu.memory_space<vmem>>) attributes {dimension_semantics = [], scalar_prefetch = 0 : i64, scratch_operands = 0 : i64, tpu.core_type = #tpu.core_type<tc>} {
    %c0 = arith.constant 0 : index
    %c0_0 = arith.constant 0 : index
    %0 = vector.load %arg0[%c0, %c0_0] : memref<8x32xf32, #tpu.memory_space<vmem>>, vector<8x32xf32>
    %c0_1 = arith.constant 0 : index
    %c0_2 = arith.constant 0 : index
    %1 = vector.load %arg1[%c0_1, %c0_2] : memref<5x32xf32, #tpu.memory_space<vmem>>, vector<5x32xf32>
    %c0_3 = arith.constant 0 : index
    %c0_4 = arith.constant 0 : index
    %2 = vector.load %arg2[%c0_3, %c0_4] : memref<1x5xf32, #tpu.memory_space<vmem>>, vector<1x5xf32>
    %cst = arith.constant dense<0.000000e+00> : vector<8x5xf32>
    %3 = tpu.matmul %0, %1, %cst {dimension_numbers = #tpu.dot_dimension_numbers<[1], [1], [0], [0], [0, 0, 1, 0], [], []>} : vector<8x32xf32>, vector<5x32xf32>, vector<8x5xf32> -> vector<8x5xf32>
    %4 = vector.broadcast %2 : vector<1x5xf32> to vector<8x5xf32>
    %5 = arith.addf %3, %4 : vector<8x5xf32>
    %cst_5 = arith.constant dense<0xFF800000> : vector<8xf32>
    %6 = vector.multi_reduction <maximumf>, %5, %cst_5 [1] : vector<8x5xf32> to vector<8xf32>
    %7 = vector.shape_cast %6 : vector<8xf32> to vector<8x1xf32>
    %8 = vector.broadcast %7 : vector<8x1xf32> to vector<8x5xf32>
    %9 = arith.subf %5, %8 : vector<8x5xf32>
    %10 = math.exp %9 : vector<8x5xf32>
    %cst_6 = arith.constant dense<0.000000e+00> : vector<8xf32>
    %11 = vector.multi_reduction <add>, %10, %cst_6 [1] : vector<8x5xf32> to vector<8xf32>
    %12 = vector.shape_cast %11 : vector<8xf32> to vector<8x1xf32>
    %13 = vector.broadcast %12 : vector<8x1xf32> to vector<8x5xf32>
    %14 = arith.divf %10, %13 : vector<8x5xf32>
    %c0_7 = arith.constant 0 : index
    %c0_8 = arith.constant 0 : index
    %15 = vector.load %arg3[%c0_7, %c0_8] : memref<8x5xf32, #tpu.memory_space<vmem>>, vector<8x5xf32>
    tpu.vector_store %arg3[%c0_7, %c0_8], %14 {strides = array<i32>} : memref<8x5xf32, #tpu.memory_space<vmem>>, vector<8x5xf32>,
    return
  }
}

</mosaic_0001>

<bundles_post_ra>
// kernel: tpu_custom_call.1
= control target key start
LH: loop header
LB: loop body
LE: loop exit
PB: predicated region body
PF: predicated region fallthrough
CT: control target
= control target key end

     0   :  { %8 = vsyncpa [#allocation3], 0  ;;  %s312_s0 = inlined_call_operand.hbm [shape: f32[8,32], index: 0, kind: input, shape index: {}]   ;;  %s313_s1 = inlined_call_operand.hbm [shape: f32[5,32], index: 1, kind: input, shape index: {}]   ;;  %s314_s2 = inlined_call_operand.vmem [shape: f32[1,5], index: 2, kind: input, shape index: {}]   ;;  %s315_s3 = inlined_call_operand.hbm [shape: f32[8,5], index: 3, kind: output, shape index: {}]  }
   0x1   :  { %9 = vsyncpa [#allocation6], 0 }
   0x2   :  { %10 = vsyncpa [#allocation4], 0  ;;  %s245_s12 = smov [#allocation2]   ;;  %s246_s14 = smov [#allocation5]  }
   0x3   :  { %s17_s13 = sshll.u32 %s245_s12, 4  ;;  %s27_s15 = sshll.u32 %s246_s14, 4  ;;  %s18_s13 = int_to_ptr.vmem [resolvable:$true] %s17_s13  ;;  %s28_s15 = int_to_ptr.vmem [resolvable:$true] %s27_s15 }
   0x4   :  { %s173_s18 = scalar_lea.hbm %s312_s0, 128 }
   0x5   :  { %p174_p0 = scmp.ne.s32.totalorder %s312_s0, %s173_s18  ;;  %p177_p1 = scmp.lt.u32.totalorder %s173_s18, %s312_s0 }
   0x7   :  { %p179_p2 = pnand %p177_p1, %p174_p0 }
   0x9   :  { %182 = shalt.err (!%p179_p2)
}
   0xa   :  { %s183_s23 = scalar_lea.vmem %s18_s13, 128  ;;  %p188_p4 = scmp.lt.s32.totalorder %s18_s13, %s18_s13 }
   0xb   :  { %p184_p3 = scmp.ne.s32.totalorder %s18_s13, %s183_s23  ;;  %p189_p5 = scmp.lt.s32.totalorder %s183_s23, %s183_s23 }
   0xd   :  { %p190_p6 = por %p189_p5, %p188_p4 }
   0xf   :  { %p191_p7 = pnand %p190_p6, %p184_p3 }
  0x11   :  { %194 = shalt.err (!%p191_p7)
}
  0x12   :  { %20 = dma.hbm_to_vmem [thread:$0]  %s312_s0, 128, %s18_s13, [#allocation3]  }
  0x13   :  { %s195_s28 = scalar_lea.hbm %s313_s1, 128 }
  0x14   :  { %p196_p8 = scmp.ne.s32.totalorder %s313_s1, %s195_s28  ;;  %p199_p9 = scmp.lt.u32.totalorder %s195_s28, %s313_s1 }
  0x16   :  { %p201_p10 = pnand %p199_p9, %p196_p8 }
  0x18   :  { %204 = shalt.err (!%p201_p10)
}
  0x19   :  { %s205_s6 = scalar_lea.vmem %s28_s15, 128  ;;  %p210_p12 = scmp.lt.s32.totalorder %s28_s15, %s28_s15 }
  0x1a   :  { %p206_p11 = scmp.ne.s32.totalorder %s28_s15, %s205_s6  ;;  %p211_p13 = scmp.lt.s32.totalorder %s205_s6, %s205_s6 }
  0x1c   :  { %p212_p0 = por %p211_p13, %p210_p12 }
  0x1e   :  { %p213_p1 = pnand %p212_p0, %p206_p11 }
  0x20   :  { %216 = shalt.err (!%p213_p1)
}
  0x21   :  { %30 = dma.hbm_to_vmem [thread:$0]  %s313_s1, 128, %s28_s15, [#allocation6]  }
  0x22   :  { %239 = dma.done.wait [#allocation3], 128  }
  0x23   :  { %240 = vsyncadd [#allocation3], 4294967168 }
  0x24   :  { %241 = dma.done.wait [#allocation6], 128  }
  0x25   :  { %242 = vsyncadd [#allocation6], 4294967168  ;;  %v247_v0 = vmov 0.0   ;;  %vm248_vm0 = vmmov 0   ;;  %vm48_vm1 = vcmask 261120   ;;  %v39_v2 = vld [vmem:[#allocation2] sm:$0xff] }
  0x26   :  { %159 = vmatprep.subr.mxu0 %v247_v0  ;;  %161 = vmatprep.mubr.msk.f32.mxu0 %vm248_vm0, %v247_v0  ;;  %v40_v1 = vld [vmem:[#allocation5] sm:$0x1f]  ;;  %v154_v3 = vld [vmem:[%s314_s2] ss:$0 sm:$0xff]  ;;  %vm125_vm2 = vcmask 39936   ;;  %s249_s1 = smov [#allocation7]  }
  0x27   :  { %160 = vmatpush3.xpose.msk.msra.mxu0 %vm48_vm1, %v40_v1  ;;  %s144_s10 = sshll.u32 %s249_s1, 4  ;;  %s145_s10 = int_to_ptr.vmem [resolvable:$true] %s144_s10 }
  0x28   :  { %s217_s2 = scalar_lea.vmem %s145_s10, 128  ;;  %p222_p3 = scmp.lt.s32.totalorder %s145_s10, %s145_s10 }
  0x29   :  { %p218_p2 = scmp.ne.s32.totalorder %s145_s10, %s217_s2  ;;  %p223_p4 = scmp.lt.s32.totalorder %s217_s2, %s217_s2 }
  0x2a   :  { %162 = vmatmul.mubr.msk.f32.vlgmr.msra.gmra.mrb[0].mxu0 %vm48_vm1, %v39_v2 }
  0x2b   :  { %p224_p5 = por %p223_p4, %p222_p3 }
  0x2d   :  { %p225_p6 = pnand %p224_p5, %p218_p2 }
  0xfd   :  { %v121_v4 = vpop.f32.mrb[0].mxu0 }
  0xfe   :  { %v122_v5 = vadd.f32 %v154_v3, %v121_v4  ;;  %v163_v6 = vpop.f32.mrb[1].mxu0 }
 0x100   :  { %v126_v7 = vsel %vm125_vm2, %v122_v5, -inf }
 0x101   :  { %127 = vmax.xlane.f32.xlu0 %v126_v7 }
 0x18e   :  { %v128_v8 = vpop.xlane.xlu0 %127 }
 0x18f   :  { %v129_v9 = vsub.f32 %v122_v5, %v128_v8 }
 0x191   :  { %v130_v10 = vmul.f32 1.442695, %v129_v9 }
 0x193   :  { %169 = vpow2.f32 %v130_v10 }
 0x19d   :  { %v170_v11 = vpop.eup %169 }
 0x19e   :  { %v132_v12 = vsel %vm125_vm2, %v170_v11, 0.0 }
 0x19f   :  { %133 = vadd.xlane.f32.xlu0 %v132_v12 }
 0x22c   :  { %v134_v13 = vpop.xlane.xlu0 %133 }
 0x22d   :  { %171 = vrcp.f32 %v134_v13 }
 0x237   :  { %v172_v14 = vpop.eup %171 }
 0x238   :  { %v136_v15 = vmul.f32 %v172_v14, %v170_v11 }
 0x23a   :  { %137 = vst.msk [vmem:[#allocation7] sm:$0xff] %vm125_vm2, %v136_v15 }
 0x23b   :  { %228 = shalt.err (!%p225_p6)
}
 0x23c   :  { %s229_s13 = scalar_lea.hbm %s315_s3, 128 }
 0x23d   :  { %p230_p7 = scmp.ne.s32.totalorder %s315_s3, %s229_s13  ;;  %p233_p8 = scmp.lt.u32.totalorder %s229_s13, %s315_s3 }
 0x23f   :  { %p235_p9 = pnand %p233_p8, %p230_p7 }
 0x241   :  { %238 = shalt.err (!%p235_p9)
}
 0x242   :  { %147 = dma.vmem_to_hbm [thread:$0]  %s145_s10, 128, %s315_s3, [#allocation4]  }
 0x243   :  { %243 = dma.done.wait [#allocation4], 128  }
 0x244   :  { %244 = vsyncadd [#allocation4], 4294967168 }
 0x245   :  { %151 = vsyncpa [#allocation3], 1 }
 0x246   :  { %152 = vsyncpa [#allocation6], 1 }
 0x247   :  { %153 = vsyncpa [#allocation4], 1 }

</bundles_post_ra>
